<compile_context>
chip_gen: v7x
topology: tpu7x:2x2x1
jax: 0.10.0
libtpu: 0.0.40
codegen_flags: <defaults>
</compile_context>

<pallas_src>
import numpy as np
import jax
import jax.numpy as jnp
from jax.experimental import pallas as pl
from jax.experimental.pallas import tpu as pltpu


def _round_up(v, m):
    return ((v + m - 1) // m) * m


# --------------------------------------------------------------------------
# Kernel: whole (folded) MLP on one batch tile.
# --------------------------------------------------------------------------
def sqerr_mlp_kernel(x_ref, w1_ref, w23_ref, b_ref, o_ref):
    hid_pad = w1_ref.shape[1]     # 256: padded hidden width
    out_pad = o_ref.shape[1]      # 128: padded output width

    # b_ref rows: [b1_folded, b2_folded, b3_folded] (f32, zero-padded).
    b1 = b_ref[0:1, :hid_pad]
    b2 = b_ref[1:2, :hid_pad]
    b3 = b_ref[2:3, :out_pad]

    # Layer 1: (folded standardization) Linear -> Dropout(eval: identity) -> ReLU.
    # (BatchNorm1 is folded into w2/b2.)  x is already bf16 (cast in wrapper).
    h = jnp.dot(x_ref[...], w1_ref[...], preferred_element_type=jnp.float32) + b1
    h = jnp.maximum(h, 0.0)

    # Layer 2: (folded BN1) Linear -> Dropout(eval) -> ReLU.
    # (BatchNorm2 is folded into w3/b3.)  Static lane-aligned slice of w23.
    h = jnp.dot(h.astype(jnp.bfloat16), w23_ref[:, :hid_pad],
                preferred_element_type=jnp.float32) + b2
    h = jnp.maximum(h, 0.0)

    # Layer 3: (folded BN2) Linear.  Output is lane-dense (128 padded cols).
    o_ref[...] = jnp.dot(h.astype(jnp.bfloat16), w23_ref[:, hid_pad:],
                         preferred_element_type=jnp.float32) + b3


# --------------------------------------------------------------------------
# Wrapper: batch grid, resident weights, lane-dense padded output.
# --------------------------------------------------------------------------
def sqerr_forward(x_raw, kernel_params, n_out):
    """x_raw: un-standardized input (standardization is folded into w1/b1)."""
    w1, w23, b_stack = kernel_params
    B, n_in = x_raw.shape
    hid_pad = w1.shape[1]
    out_pad = w23.shape[1] - hid_pad

    # Cast in the wrapper: halves input DMA bytes, bit-identical to in-kernel cast.
    x = x_raw.astype(jnp.bfloat16)

    # Batch tile: up to 1024 rows (amortizes the ~0.35us per-grid-step fixed cost
    # and the MXU weight push); small batches rounded to 16 rows so the bf16 LHS
    # fills a native (16,128) vreg tile.
    tb = min(1024, max(16, _round_up(B, 16)))
    Bp = _round_up(B, tb)
    if Bp != B:
        x = jnp.pad(x, ((0, Bp - B), (0, 0)))

    out = pl.pallas_call(
        sqerr_mlp_kernel,
        out_shape=jax.ShapeDtypeStruct((Bp, out_pad), jnp.float32),
        grid_spec=pltpu.PrefetchScalarGridSpec(
            num_scalar_prefetch=0,
            grid=(Bp // tb,),
            in_specs=[
                pl.BlockSpec((tb, n_in), lambda i: (i, 0)),
                # Constant block index -> weights/biases stay VMEM-resident
                # across batch tiles (no per-tile re-DMA).
                pl.BlockSpec(w1.shape, lambda i: (0, 0)),
                pl.BlockSpec(w23.shape, lambda i: (0, 0)),
                pl.BlockSpec(b_stack.shape, lambda i: (0, 0)),
            ],
            out_specs=pl.BlockSpec((tb, out_pad), lambda i: (i, 0)),
        ),
        compiler_params=pltpu.CompilerParams(
            # Batch tiles are independent; on v7x keep the grid an even multiple
            # of 2 when possible so both TensorCores get work.
            dimension_semantics=("parallel",),
        ),
    )(x, w1, w23, b_stack)

    # Drop batch padding and the zero-padded output columns.
    return out[:B, :n_out]


# --------------------------------------------------------------------------
# Parameter construction (PyTorch-default init + BN running stats) and the
# glue-side fold / pad / cast that produces the kernel operands.
# --------------------------------------------------------------------------
def make_raw_params(key, n_in, hidden, n_out):
    def linear_init(k, fan_in, fan_out):
        kw, kb = jax.random.split(k)
        bound = 1.0 / np.sqrt(fan_in)
        w = jax.random.uniform(kw, (fan_in, fan_out), jnp.float32, -bound, bound)
        b = jax.random.uniform(kb, (fan_out,), jnp.float32, -bound, bound)
        return w, b

    k1, k2, k3 = jax.random.split(key, 3)
    w1, b1 = linear_init(k1, n_in, hidden)
    w2, b2 = linear_init(k2, hidden, hidden)
    w3, b3 = linear_init(k3, hidden, n_out)

    # BatchNorm1d eval: y = (x - running_mean)/sqrt(running_var+eps)*gamma + beta
    # PyTorch defaults: gamma=1, beta=0, running_mean=0, running_var=1.
    eps = 1e-5
    gamma = jnp.ones((hidden,), jnp.float32)
    beta = jnp.zeros((hidden,), jnp.float32)
    rmean = jnp.zeros((hidden,), jnp.float32)
    rvar = jnp.ones((hidden,), jnp.float32)
    scale = gamma / jnp.sqrt(rvar + eps)
    shift = beta - rmean * scale
    return dict(w1=w1, b1=b1, w2=w2, b2=b2, w3=w3, b3=b3,
                s1=scale, t1=shift, s2=scale, t2=shift)


def prepare_kernel_params(raw, X_means, X_stds):
    """Fold input standardization into Linear1, BN into the following Linear,
    pad to lane-aligned widths (hidden->256, out->128), concatenate w2/w3 into
    one operand, stack biases into one operand, cast weights to bf16."""
    w1, b1 = raw["w1"], raw["b1"]
    w2, b2 = raw["w2"], raw["b2"]
    w3, b3 = raw["w3"], raw["b3"]
    s1, t1, s2, t2 = raw["s1"], raw["t1"], raw["s2"], raw["t2"]

    # ((X - m)/s) @ W + b  ==  X @ (W / s[:,None]) + (b - (m/s) @ W)
    inv_std = (1.0 / X_stds).reshape(-1)                       # (n_in,)
    means = X_means.reshape(-1)                                # (n_in,)
    w1f = w1 * inv_std[:, None]
    b1f = b1 - (means * inv_std) @ w1

    # (relu_out * s + t) @ W + b  ==  relu_out @ (s[:,None]*W) + (t @ W + b)
    w2f = s1[:, None] * w2
    b2f = b2 + t1 @ w2
    w3f = s2[:, None] * w3
    b3f = b3 + t2 @ w3

    n_in, hidden = w1.shape
    n_out = w3.shape[1]
    hid_pad = _round_up(hidden, 128)   # 256
    out_pad = _round_up(n_out, 128)    # 128 (decoupled from hidden pad)
    bcols = max(hid_pad, out_pad)

    def pad2(a, rows, cols):
        return jnp.pad(a, ((0, rows - a.shape[0]), (0, cols - a.shape[1])))

    def pad1(a, cols):
        return jnp.pad(a, ((0, cols - a.shape[0]),))

    w1p = pad2(w1f, n_in, hid_pad)                             # (n_in, 256)
    w2p = pad2(w2f, hid_pad, hid_pad)                          # (256, 256)
    w3p = pad2(w3f, hid_pad, out_pad)                          # (256, 128)
    # Single weight operand for layers 2+3; kernel slices at lane boundary 256.
    w23 = jnp.concatenate([w2p, w3p], axis=1)                  # (256, 384)
    b_stack = jnp.stack([pad1(b1f, bcols), pad1(b2f, bcols), pad1(b3f, bcols)],
                        axis=0).astype(jnp.float32)            # (3, 256) f32

    return (w1p.astype(jnp.bfloat16),
            w23.astype(jnp.bfloat16),
            b_stack)


# --------------------------------------------------------------------------
# References.
# --------------------------------------------------------------------------
def reference_forward_f32(X_raw, raw, X_means, X_stds):
    """Standardize-then-forward, unfolded, unpadded, full-f32 eval-mode module
    (matches the PyTorch math of predict()'s preprocessing + forward())."""
    x = (X_raw - X_means) / X_stds
    h = jnp.maximum(x @ raw["w1"] + raw["b1"], 0.0) * raw["s1"] + raw["t1"]
    h = jnp.maximum(h @ raw["w2"] + raw["b2"], 0.0) * raw["s2"] + raw["t2"]
    return h @ raw["w3"] + raw["b3"]


def reference_forward_bf16(X_raw, kernel_params, n_out):
    """Pure-JAX replica of the exact kernel arithmetic (folded, padded, bf16)."""
    w1, w23, b_stack = kernel_params
    hid_pad = w1.shape[1]
    out_pad = w23.shape[1] - hid_pad
    b1 = b_stack[0:1, :hid_pad]
    b2 = b_stack[1:2, :hid_pad]
    b3 = b_stack[2:3, :out_pad]
    h = jnp.dot(X_raw.astype(jnp.bfloat16), w1,
                preferred_element_type=jnp.float32) + b1
    h = jnp.maximum(h, 0.0)
    h = jnp.dot(h.astype(jnp.bfloat16), w23[:, :hid_pad],
                preferred_element_type=jnp.float32) + b2
    h = jnp.maximum(h, 0.0)
    o = jnp.dot(h.astype(jnp.bfloat16), w23[:, hid_pad:],
                preferred_element_type=jnp.float32) + b3
    return o[:, :n_out]


if __name__ == "__main__":
    B, N_IN, HIDDEN, N_OUT = 8, 16, 200, 1

    key = jax.random.PRNGKey(0)
    kx, kp, km = jax.random.split(key, 3)

    raw = make_raw_params(kp, N_IN, HIDDEN, N_OUT)

    # Standardization constants from the module constructor (predict() applies
    # (X - X_means)/X_stds before forward(); here it is folded into w1/b1).
    X_means = jax.random.normal(km, (1, N_IN), jnp.float32) * 0.1
    X_stds = jnp.ones((1, N_IN), jnp.float32) * 2.0
    kparams = prepare_kernel_params(raw, X_means, X_stds)

    X_raw = jax.random.normal(kx, (B, N_IN), jnp.float32) * 3.0 + 1.5

    out = sqerr_forward(X_raw, kparams, N_OUT)
    out = jax.block_until_ready(out)

    # 1) Exact-math check against a pure-JAX replica of the kernel arithmetic.
    ref_b = reference_forward_bf16(X_raw, kparams, N_OUT)
    np.testing.assert_allclose(np.asarray(out), np.asarray(ref_b),
                               rtol=1e-3, atol=1e-3)

    # 2) Semantic check against the unfolded full-f32 module (bf16-weight tol).
    ref_f = reference_forward_f32(X_raw, raw, X_means, X_stds)
    np.testing.assert_allclose(np.asarray(out), np.asarray(ref_f),
                               rtol=5e-2, atol=5e-2)

    # TODO(synk): training-mode Dropout/BatchNorm (stochastic mask, batch-stat
    # updates) is not implemented; eval-mode inference semantics only.
    print("KERNEL_OK")
</pallas_src>

<mosaic_0001>
module attributes {stable_mosaic.version = 11 : i64} {
  func.func @sqerr_mlp_kernel(%arg0: i32, %arg1: memref<16x16xbf16, #tpu.memory_space<vmem>>, %arg2: memref<16x256xbf16, #tpu.memory_space<vmem>>, %arg3: memref<256x384xbf16, #tpu.memory_space<vmem>>, %arg4: memref<3x256xf32, #tpu.memory_space<vmem>>, %arg5: memref<16x128xf32, #tpu.memory_space<vmem>>) attributes {dimension_semantics = [#tpu.dimension_semantics<parallel>], iteration_bounds = array<i64: 1>, scalar_prefetch = 0 : i64, scratch_operands = 0 : i64, tpu.core_type = #tpu.core_type<tc>, window_params = [{transform_indices = @transform_0, window_bounds = array<i64: 16, 16>}, {pipeline_mode = #tpu.pipeline_mode<synchronous>, transform_indices = @transform_1, window_bounds = array<i64: 16, 256>}, {pipeline_mode = #tpu.pipeline_mode<synchronous>, transform_indices = @transform_2, window_bounds = array<i64: 256, 384>}, {pipeline_mode = #tpu.pipeline_mode<synchronous>, transform_indices = @transform_3, window_bounds = array<i64: 3, 256>}, {transform_indices = @transform_4, window_bounds = array<i64: 16, 128>}]} {
    %c0 = arith.constant 0 : index
    %c0_0 = arith.constant 0 : index
    %0 = vector.load %arg4[%c0, %c0_0] : memref<3x256xf32, #tpu.memory_space<vmem>>, vector<1x256xf32>
    %c1 = arith.constant 1 : index
    %c0_1 = arith.constant 0 : index
    %1 = vector.load %arg4[%c1, %c0_1] : memref<3x256xf32, #tpu.memory_space<vmem>>, vector<1x256xf32>
    %c2 = arith.constant 2 : index
    %c0_2 = arith.constant 0 : index
    %2 = vector.load %arg4[%c2, %c0_2] : memref<3x256xf32, #tpu.memory_space<vmem>>, vector<1x128xf32>
    %c0_3 = arith.constant 0 : index
    %c0_4 = arith.constant 0 : index
    %3 = vector.load %arg1[%c0_3, %c0_4] : memref<16x16xbf16, #tpu.memory_space<vmem>>, vector<16x16xbf16>
    %c0_5 = arith.constant 0 : index
    %c0_6 = arith.constant 0 : index
    %4 = vector.load %arg2[%c0_5, %c0_6] : memref<16x256xbf16, #tpu.memory_space<vmem>>, vector<16x256xbf16>
    %cst = arith.constant dense<0.000000e+00> : vector<16x256xf32>
    %5 = tpu.matmul %3, %4, %cst {dimension_numbers = #tpu.dot_dimension_numbers<[1], [0], [0], [1], [0, 0, 1, 1], [], []>} : vector<16x16xbf16>, vector<16x256xbf16>, vector<16x256xf32> -> vector<16x256xf32>
    %6 = vector.broadcast %0 : vector<1x256xf32> to vector<16x256xf32>
    %7 = arith.addf %5, %6 : vector<16x256xf32>
    %cst_7 = arith.constant 0.000000e+00 : f32
    %8 = vector.broadcast %cst_7 : f32 to vector<16x256xf32>
    %9 = arith.maximumf %7, %8 : vector<16x256xf32>
    %10 = arith.truncf %9 : vector<16x256xf32> to vector<16x256xbf16>
    %c0_8 = arith.constant 0 : index
    %c0_9 = arith.constant 0 : index
    %11 = vector.load %arg3[%c0_8, %c0_9] : memref<256x384xbf16, #tpu.memory_space<vmem>>, vector<256x256xbf16>
    %cst_10 = arith.constant dense<0.000000e+00> : vector<16x256xf32>
    %12 = tpu.matmul %10, %11, %cst_10 {dimension_numbers = #tpu.dot_dimension_numbers<[1], [0], [0], [1], [0, 0, 1, 1], [], []>} : vector<16x256xbf16>, vector<256x256xbf16>, vector<16x256xf32> -> vector<16x256xf32>
    %13 = vector.broadcast %1 : vector<1x256xf32> to vector<16x256xf32>
    %14 = arith.addf %12, %13 : vector<16x256xf32>
    %cst_11 = arith.constant 0.000000e+00 : f32
    %15 = vector.broadcast %cst_11 : f32 to vector<16x256xf32>
    %16 = arith.maximumf %14, %15 : vector<16x256xf32>
    %17 = arith.truncf %16 : vector<16x256xf32> to vector<16x256xbf16>
    %c0_12 = arith.constant 0 : index
    %c256 = arith.constant 256 : index
    %18 = vector.load %arg3[%c0_12, %c256] : memref<256x384xbf16, #tpu.memory_space<vmem>>, vector<256x128xbf16>
    %cst_13 = arith.constant dense<0.000000e+00> : vector<16x128xf32>
    %19 = tpu.matmul %17, %18, %cst_13 {dimension_numbers = #tpu.dot_dimension_numbers<[1], [0], [0], [1], [0, 0, 1, 1], [], []>} : vector<16x256xbf16>, vector<256x128xbf16>, vector<16x128xf32> -> vector<16x128xf32>
    %20 = vector.broadcast %2 : vector<1x128xf32> to vector<16x128xf32>
    %21 = arith.addf %19, %20 : vector<16x128xf32>
    %c0_14 = arith.constant 0 : index
    %c0_15 = arith.constant 0 : index
    %22 = vector.load %arg5[%c0_14, %c0_15] : memref<16x128xf32, #tpu.memory_space<vmem>>, vector<16x128xf32>
    tpu.vector_store %arg5[%c0_14, %c0_15], %21 {strides = array<i32>} : memref<16x128xf32, #tpu.memory_space<vmem>>, vector<16x128xf32>,
    return
  }
  func.func @transform_0(%arg0: i32) -> (i32, i32) {
    %c0_i32 = arith.constant 0 : i32
    %c0_i32_0 = arith.constant 0 : i32
    return %arg0, %c0_i32 : i32, i32
  }
  func.func @transform_1(%arg0: i32) -> (i32, i32) {
    %c0_i32 = arith.constant 0 : i32
    %c0_i32_0 = arith.constant 0 : i32
    %c0_i32_1 = arith.constant 0 : i32
    return %c0_i32, %c0_i32_0 : i32, i32
  }
  func.func @transform_2(%arg0: i32) -> (i32, i32) {
    %c0_i32 = arith.constant 0 : i32
    %c0_i32_0 = arith.constant 0 : i32
    %c0_i32_1 = arith.constant 0 : i32
    return %c0_i32, %c0_i32_0 : i32, i32
  }
  func.func @transform_3(%arg0: i32) -> (i32, i32) {
    %c0_i32 = arith.constant 0 : i32
    %c0_i32_0 = arith.constant 0 : i32
    %c0_i32_1 = arith.constant 0 : i32
    return %c0_i32, %c0_i32_0 : i32, i32
  }
  func.func @transform_4(%arg0: i32) -> (i32, i32) {
    %c0_i32 = arith.constant 0 : i32
    %c0_i32_0 = arith.constant 0 : i32
    return %arg0, %c0_i32 : i32, i32
  }
}

</mosaic_0001>

<bundles_post_ra>
// kernel: tpu_custom_call.1
= control target key start
LH: loop header
LB: loop body
LE: loop exit
PB: predicated region body
PF: predicated region fallthrough
CT: control target
= control target key end

     0   :  { %9 = vsyncpa [#allocation3], 0  ;;  %s940_s0 = inlined_call_operand.hbm [shape: bf16[16,16], index: 0, kind: input, shape index: {}]   ;;  %s941_s1 = inlined_call_operand.hbm [shape: bf16[16,256], index: 1, kind: input, shape index: {}]   ;;  %s942_s2 = inlined_call_operand.hbm [shape: bf16[256,384], index: 2, kind: input, shape index: {}]   ;;  %s943_s3 = inlined_call_operand.vmem [shape: f32[3,256], index: 3, kind: input, shape index: {}]   ;;  %s944_s4 = inlined_call_operand.hbm [shape: f32[16,128], index: 4, kind: output, shape index: {}]  }
   0x1   :  { %10 = vsyncpa [#allocation6], 0 }
   0x2   :  { %11 = vsyncpa [#allocation4], 0  ;;  %s841_s15 = smov [#allocation5]   ;;  %s747_s19 = scalar_lea.hbm %s941_s1, 256 }
   0x3   :  { %s29_s16 = sshll.u32 %s841_s15, 4  ;;  %p748_p0 = scmp.ne.s32.totalorder %s941_s1, %s747_s19  ;;  %s30_s16 = int_to_ptr.vmem [resolvable:$true] %s29_s16 }
   0x4   :  { %p751_p1 = scmp.lt.u32.totalorder %s747_s19, %s941_s1 }
   0x6   :  { %p753_p2 = pnand %p751_p1, %p748_p0 }
   0x8   :  { %756 = shalt.err (!%p753_p2)
}
   0x9   :  { %s757_s24 = scalar_lea.vmem %s30_s16, 256  ;;  %p762_p4 = scmp.lt.s32.totalorder %s30_s16, %s30_s16 }
   0xa   :  { %p758_p3 = scmp.ne.s32.totalorder %s30_s16, %s757_s24  ;;  %p763_p5 = scmp.lt.s32.totalorder %s757_s24, %s757_s24 }
   0xc   :  { %p764_p6 = por %p763_p5, %p762_p4 }
   0xe   :  { %p765_p7 = pnand %p764_p6, %p758_p3 }
  0x10   :  { %768 = shalt.err (!%p765_p7)
}
  0x11   :  { %s842_s25 = smov 128   ;;  %s843_s26 = smov 8  }
  0x12   :  { %35 = dma.hbm_to_vmem [thread:$0]  %s941_s1, 256, %s30_s16, [#allocation6], %s842_s25, %s842_s25, %s843_s26  }
  0x13   :  { %s844_s29 = smov [#allocation2]   ;;  %s769_s7 = scalar_lea.hbm %s940_s0, 128 }
  0x14   :  { %s17_s30 = sshll.u32 %s844_s29, 4  ;;  %p770_p8 = scmp.ne.s32.totalorder %s940_s0, %s769_s7  ;;  %s18_s30 = int_to_ptr.vmem [resolvable:$true] %s17_s30 }
  0x15   :  { %p773_p9 = scmp.lt.u32.totalorder %s769_s7, %s940_s0 }
  0x17   :  { %p775_p10 = pnand %p773_p9, %p770_p8 }
  0x19   :  { %778 = shalt.err (!%p775_p10)
}
  0x1a   :  { %s779_s12 = scalar_lea.vmem %s18_s30, 128  ;;  %p784_p12 = scmp.lt.s32.totalorder %s18_s30, %s18_s30 }
  0x1b   :  { %p780_p11 = scmp.ne.s32.totalorder %s18_s30, %s779_s12  ;;  %p785_p13 = scmp.lt.s32.totalorder %s779_s12, %s779_s12 }
  0x1d   :  { %p786_p0 = por %p785_p13, %p784_p12 }
  0x1f   :  { %p787_p1 = pnand %p786_p0, %p780_p11 }
  0x21   :  { %790 = shalt.err (!%p787_p1)
}
  0x22   :  { %s845_s1 = smov 64   ;;  %s846_s13 = smov 4  }
  0x23   :  { %23 = dma.hbm_to_vmem [thread:$0]  %s940_s0, 128, %s18_s30, [#allocation3], %s845_s1, %s845_s1, %s846_s13  }
  0x24   :  { %s847_s16 = smov [#allocation7]   ;;  %s791_s20 = scalar_lea.hbm %s942_s2, 6144 }
  0x25   :  { %s41_s17 = sshll.u32 %s847_s16, 4  ;;  %p792_p2 = scmp.ne.s32.totalorder %s942_s2, %s791_s20  ;;  %s42_s17 = int_to_ptr.vmem [resolvable:$true] %s41_s17 }
  0x26   :  { %p795_p3 = scmp.lt.u32.totalorder %s791_s20, %s942_s2 }
  0x28   :  { %p797_p4 = pnand %p795_p3, %p792_p2 }
  0x2a   :  { %800 = shalt.err (!%p797_p4)
}
  0x2b   :  { %s801_s27 = scalar_lea.vmem %s42_s17, 6144  ;;  %p806_p6 = scmp.lt.s32.totalorder %s42_s17, %s42_s17 }
  0x2c   :  { %p802_p5 = scmp.ne.s32.totalorder %s42_s17, %s801_s27  ;;  %p807_p7 = scmp.lt.s32.totalorder %s801_s27, %s801_s27 }
  0x2e   :  { %p808_p8 = por %p807_p7, %p806_p6 }
  0x30   :  { %p809_p9 = pnand %p808_p8, %p802_p5 }
  0x32   :  { %812 = shalt.err (!%p809_p9)
}
  0x33   :  { %s848_s0 = smov 192   ;;  %s849_s28 = smov 12  }
  0x34   :  { %47 = dma.hbm_to_vmem [thread:$0]  %s942_s2, 6144, %s42_s17, [#allocation6], %s848_s0, %s848_s0, %s849_s28  }
  0x35   :  { %835 = dma.done.wait [#allocation3], 128  }
  0x36   :  { %836 = vsyncadd [#allocation3], 4294967168 }
  0x37   :  { %837 = dma.done.wait [#allocation6], 6400  }
  0x38   :  { %838 = vsyncadd [#allocation6], 4294960896  ;;  %v850_v0 = vmov 0   ;;  %v679_v1 = vld [vmem:[#allocation5 + $0x4] ss:$8 sps:$4 sm:$0xff]   ;;  %v682_v3 = vld [vmem:[#allocation2] sm:$0xff]   ;;  %v69_v47 = vlaneseq }
  0x39   :  { %130 = vmatprep.mubr.bf16.mxu0 %v850_v0  ;;  %v681_v2 = vld [vmem:[#allocation5] ss:$8 sps:$4 sm:$0xff]   ;;  %98 = vmatprep.subr.bf16.mxu0 %v679_v1  ;;  %vm94_vm0 = vcmask 130048   ;;  %v685_v5 = vld [vmem:[#allocation7] ss:$12 sps:$4 sm:$0xff]   ;;  %s851_s10 = smov [#allocation8]  }
  0x3a   :  { %99 = vmatpush1.bf16.msra.mxu0 %v681_v2  ;;  %v683_v4 = vld [vmem:[#allocation7 + $0x4] ss:$12 sps:$4 sm:$0xff]   ;;  %v686_v6 = vld [vmem:[#allocation7 + $0x1c] ss:$12 sps:$4 sm:$0xff]   ;;  %v689_v8 = vld [vmem:[#allocation7 + $0x34] ss:$12 sps:$4 sm:$0xff]  }
  0x3b   :  { %350 = vmatprep.subr.bf16.mxu1 %v683_v4  ;;  %v688_v7 = vld [vmem:[#allocation7 + $0x18] ss:$12 sps:$4 sm:$0xff]   ;;  %v691_v9 = vld [vmem:[#allocation7 + $0x30] ss:$12 sps:$4 sm:$0xff]   ;;  %v694_v11 = vld [vmem:[#allocation7 + $0x48] ss:$12 sps:$4 sm:$0xff]  }
  0x3c   :  { %351 = vmatpush1.bf16.msra.mxu1 %v685_v5  ;;  %v692_v10 = vld [vmem:[#allocation7 + $0x4c] ss:$12 sps:$4 sm:$0xff]   ;;  %v695_v12 = vld [vmem:[#allocation7 + $0x64] ss:$12 sps:$4 sm:$0xff]   ;;  %v698_v14 = vld [vmem:[#allocation7 + $0x7c] ss:$12 sps:$4 sm:$0xff]  }
  0x3d   :  { %596 = vmatmul.mubr.msk.bf16.vlgmr.msra.gmra.mrb[0].mxu0 %vm94_vm0, %v682_v3  ;;  %352 = vmatprep.subr.bf16.mxu1 %v686_v6  ;;  %v697_v13 = vld [vmem:[#allocation7 + $0x60] ss:$12 sps:$4 sm:$0xff]   ;;  %v700_v15 = vld [vmem:[#allocation7 + $0x78] ss:$12 sps:$4 sm:$0xff]   ;;  %v703_v17 = vld [vmem:[#allocation7 + $0x90] ss:$12 sps:$4 sm:$0xff]  }
  0x3e   :  { %v701_v16 = vld [vmem:[#allocation7 + $0x94] ss:$12 sps:$4 sm:$0xff]   ;;  %v704_v18 = vld [vmem:[#allocation7 + $0xac] ss:$12 sps:$4 sm:$0xff]   ;;  %v707_v20 = vld [vmem:[#allocation7 + $0xc4] ss:$12 sps:$4 sm:$0xff]  }
  0x3f   :  { %v706_v19 = vld [vmem:[#allocation7 + $0xa8] ss:$12 sps:$4 sm:$0xff]   ;;  %v709_v21 = vld [vmem:[#allocation7 + $0xc0] ss:$12 sps:$4 sm:$0xff]   ;;  %v712_v23 = vld [vmem:[#allocation7 + $0xd8] ss:$12 sps:$4 sm:$0xff]  }
  0x40   :  { %353 = vmatpush1.bf16.msra.mxu1 %v688_v7  ;;  %v710_v22 = vld [vmem:[#allocation7 + $0xdc] ss:$12 sps:$4 sm:$0xff]   ;;  %v713_v24 = vld [vmem:[#allocation7 + $0xf4] ss:$12 sps:$4 sm:$0xff]   ;;  %v716_v26 = vld [vmem:[#allocation7 + $0x10c] ss:$12 sps:$4 sm:$0xff]  }
  0x41   :  { %354 = vmatprep.subr.bf16.mxu1 %v689_v8  ;;  %v715_v25 = vld [vmem:[#allocation7 + $0xf0] ss:$12 sps:$4 sm:$0xff]   ;;  %v718_v27 = vld [vmem:[#allocation7 + $0x108] ss:$12 sps:$4 sm:$0xff]   ;;  %v721_v29 = vld [vmem:[#allocation7 + $0x120] ss:$12 sps:$4 sm:$0xff]  }
  0x42   :  { %v719_v28 = vld [vmem:[#allocation7 + $0x124] ss:$12 sps:$4 sm:$0xff]   ;;  %v722_v30 = vld [vmem:[#allocation7 + $0x13c] ss:$12 sps:$4 sm:$0xff]   ;;  %v725_v32 = vld [vmem:[#allocation7 + $0x154] ss:$12 sps:$4 sm:$0xff]  }
  0x43   :  { %v724_v31 = vld [vmem:[#allocation7 + $0x138] ss:$12 sps:$4 sm:$0xff]   ;;  %v727_v33 = vld [vmem:[#allocation7 + $0x150] ss:$12 sps:$4 sm:$0xff]   ;;  %v730_v35 = vld [vmem:[#allocation7 + $0x168] ss:$12 sps:$4 sm:$0xff]  }
  0x44   :  { %355 = vmatpush1.bf16.msra.mxu1 %v691_v9  ;;  %v728_v34 = vld [vmem:[#allocation7 + $0x16c] ss:$12 sps:$4 sm:$0xff]   ;;  %v731_v36 = vld [vmem:[#allocation7 + $0xc8] ss:$12 sps:$4 sm:$0xff]   ;;  %v737_v42 = vld [vmem:[#allocation7 + $0x110] ss:$12 sps:$4 sm:$0xff]  }
  0x45   :  { %356 = vmatprep.subr.bf16.mxu1 %v692_v10  ;;  %v732_v37 = vld [vmem:[#allocation7 + $0x8] ss:$12 sps:$4 sm:$0xff]   ;;  %v733_v38 = vld [vmem:[#allocation7 + $0xe0] ss:$12 sps:$4 sm:$0xff]   ;;  %646 = vmatprep.subr.bf16.mxu0 %v731_v36  ;;  %v735_v40 = vld [vmem:[#allocation7 + $0xf8] ss:$12 sps:$4 sm:$0xff]  }
  0x46   :  { %647 = vmatpush3.bf16.msra.mxu0 %v732_v37  ;;  %v734_v39 = vld [vmem:[#allocation7 + $0x20] ss:$12 sps:$4 sm:$0xff]   ;;  %v736_v41 = vld [vmem:[#allocation7 + $0x38] ss:$12 sps:$4 sm:$0xff]   ;;  %v738_v43 = vld [vmem:[#allocation7 + $0x50] ss:$12 sps:$4 sm:$0xff]  }
  0x47   :  { %648 = vmatprep.subr.bf16.mxu0 %v733_v38  ;;  %v739_v44 = vld [vmem:[#allocation7 + $0x128] ss:$12 sps:$4 sm:$0xff]   ;;  %v741_v46 = vld [vmem:[#allocation7 + $0x140] ss:$12 sps:$4 sm:$0xff]   ;;  %v70_v48 = vshrl.u32 %v69_v47, 7  ;;  %s579_s11 = sshll.u32 %s851_s10, 4  ;;  %s580_s11 = int_to_ptr.vmem [resolvable:$true] %s579_s11 }
  0x48   :  { %357 = vmatpush1.bf16.msra.mxu1 %v694_v11  ;;  %v740_v45 = vld [vmem:[#allocation7 + $0x68] ss:$12 sps:$4 sm:$0xff]   ;;  %v742_v4 = vld [vmem:[#allocation7 + $0x80] ss:$12 sps:$4 sm:$0xff]   ;;  %v743_v5 = vld [vmem:[#allocation7 + $0x158] ss:$12 sps:$4 sm:$0xff]   ;;  %p818_p11 = scmp.lt.s32.totalorder %s580_s11, %s580_s11 }
  0x49   :  { %358 = vmatprep.subr.bf16.mxu1 %v695_v12  ;;  %v71_v49 = vsub.s32 0, %v70_v48  ;;  %v60_v50 = vld [vmem:[%s943_s3] ss:$4 sm:$0x3]  ;;  %v75_v51 = vsub.s32 1, %v70_v48  ;;  %s813_s12 = scalar_lea.vmem %s580_s11, 256 }
  0x4a   :  { %649 = vmatpush3.bf16.msra.mxu0 %v734_v39  ;;  %v744_v6 = vld [vmem:[#allocation7 + $0x98] ss:$12 sps:$4 sm:$0xff]   ;;  %v745_v7 = vld [vmem:[#allocation7 + $0x170] ss:$12 sps:$4 sm:$0xff]   ;;  %p814_p10 = scmp.ne.s32.totalorder %s580_s11, %s813_s12  ;;  %p819_p12 = scmp.lt.s32.totalorder %s813_s12, %s813_s12 }
  0x4b   :  { %650 = vmatprep.subr.bf16.mxu0 %v735_v40  ;;  %v72_v52 = vrot.slane %v60_v50, %v71_v49  ;;  %v76_v53 = vrot.slane %v60_v50, %v75_v51  ;;  %v746_v8 = vld [vmem:[#allocation7 + $0xb0] ss:$12 sps:$4 sm:$0xff]   ;;  %v592_v9 = vld [vmem:[%s943_s3 + $0x1] ss:$4 sm:$0x3] }
  0x4c   :  { %359 = vmatpush1.bf16.msra.mxu1 %v697_v13  ;;  %v183_v10 = vrot.slane %v592_v9, %v71_v49  ;;  %v187_v11 = vrot.slane %v592_v9, %v75_v51  ;;  %p820_p13 = por %p819_p12, %p818_p11 }
  0x4d   :  { %360 = vmatprep.subr.bf16.mxu1 %v698_v14 }
  0x4e   :  { %651 = vmatpush3.bf16.msra.mxu0 %v736_v41  ;;  %p821_p0 = pnand %p820_p13, %p814_p10 }
  0x4f   :  { %652 = vmatprep.subr.bf16.mxu0 %v737_v42 }
  0x50   :  { %361 = vmatpush1.bf16.msra.mxu1 %v700_v15 }
  0x51   :  { %362 = vmatprep.subr.bf16.mxu1 %v701_v16 }
  0x52   :  { %653 = vmatpush3.bf16.msra.mxu0 %v738_v43 }
  0x53   :  { %654 = vmatprep.subr.bf16.mxu0 %v739_v44 }
  0x54   :  { %363 = vmatpush1.bf16.msra.mxu1 %v703_v17 }
  0x55   :  { %364 = vmatprep.subr.bf16.mxu1 %v704_v18 }
  0x56   :  { %655 = vmatpush3.bf16.msra.mxu0 %v740_v45 }
  0x57   :  { %656 = vmatprep.subr.bf16.mxu0 %v741_v46 }
  0x58   :  { %365 = vmatpush1.bf16.msra.mxu1 %v706_v19 }
  0x59   :  { %366 = vmatprep.subr.bf16.mxu1 %v707_v20 }
  0x5a   :  { %657 = vmatpush3.bf16.msra.mxu0 %v742_v4 }
  0x5b   :  { %658 = vmatprep.subr.bf16.mxu0 %v743_v5 }
  0x5c   :  { %367 = vmatpush1.bf16.msra.mxu1 %v709_v21 }
  0x5d   :  { %368 = vmatprep.subr.bf16.mxu1 %v710_v22 }
  0x5e   :  { %659 = vmatpush3.bf16.msra.mxu0 %v744_v6 }
  0x5f   :  { %660 = vmatprep.subr.bf16.mxu0 %v745_v7 }
  0x60   :  { %369 = vmatpush1.bf16.msra.mxu1 %v712_v23 }
  0x61   :  { %370 = vmatprep.subr.bf16.mxu1 %v713_v24 }
  0x62   :  { %661 = vmatpush3.bf16.msra.mxu0 %v746_v8 }
  0x64   :  { %371 = vmatpush1.bf16.msra.mxu1 %v715_v25 }
  0x65   :  { %372 = vmatprep.subr.bf16.mxu1 %v716_v26 }
  0x68   :  { %373 = vmatpush1.bf16.msra.mxu1 %v718_v27  ;;  %v629_v27 = vld [vmem:[%s943_s3 + $0x2] ss:$0 sm:$0xff] }
  0x69   :  { %374 = vmatprep.subr.bf16.mxu1 %v719_v28 }
  0x6c   :  { %375 = vmatpush1.bf16.msra.mxu1 %v721_v29 }
  0x6d   :  { %376 = vmatprep.subr.bf16.mxu1 %v722_v30 }
  0x70   :  { %377 = vmatpush1.bf16.msra.mxu1 %v724_v31 }
  0x71   :  { %378 = vmatprep.subr.bf16.mxu1 %v725_v32 }
  0x74   :  { %379 = vmatpush1.bf16.msra.mxu1 %v727_v33 }
  0x75   :  { %380 = vmatprep.subr.bf16.mxu1 %v728_v34 }
  0x78   :  { %381 = vmatpush1.bf16.msra.mxu1 %v730_v35 }
 0x110   :  { %v132_v54 = vpop.f32.mrb[0].mxu0 }
 0x111   :  { %v133_v55 = vadd.f32 %v132_v54, %v72_v52  ;;  %v134_v56 = vpop.f32.mrb[1].mxu0 }
 0x112   :  { %v135_v57 = vadd.f32 %v134_v56, %v76_v53  ;;  %v136_v58 = vpop.f32.mrb[2].mxu0 }
 0x113   :  { %v137_v59 = vadd.f32 %v136_v58, %v72_v52  ;;  %v138_v60 = vpop.f32.mrb[3].mxu0  ;;  %v141_v62 = vmax.f32 %v133_v55, 0.0 }
 0x114   :  { %v139_v61 = vadd.f32 %v138_v60, %v76_v53  ;;  %v142_v0 = vmax.f32 %v135_v57, 0.0 }
 0x115   :  { %v143_v63 = vmax.f32 %v137_v59, 0.0 }
 0x116   :  { %v144_v1 = vmax.f32 %v139_v61, 0.0 }
 0x117   :  { %v145_v2 = vpack.c.bf16 %v143_v63, %v141_v62 }
 0x118   :  { %v146_v3 = vpack.c.bf16 %v144_v1, %v142_v0 }
 0x11a   :  { %382 = vmatprep.mubr.bf16.mxu1 %v146_v3 }
 0x11b   :  { %383 = vmatmul.mubr.bf16.vlgmr.msra.gmra.mrb[0].mxu1 %v145_v2 }
 0x1ee   :  { %v384_v12 = vpop.f32.mrb[0].mxu1 }
 0x1ef   :  { %v385_v13 = vadd.f32 %v384_v12, %v183_v10  ;;  %v386_v14 = vpop.f32.mrb[1].mxu1 }
 0x1f0   :  { %v387_v15 = vadd.f32 %v386_v14, %v187_v11  ;;  %v388_v16 = vpop.f32.mrb[2].mxu1 }
 0x1f1   :  { %v389_v17 = vadd.f32 %v388_v16, %v183_v10  ;;  %v390_v18 = vpop.f32.mrb[3].mxu1  ;;  %v393_v20 = vmax.f32 %v385_v13, 0.0 }
 0x1f2   :  { %v391_v19 = vadd.f32 %v390_v18, %v187_v11  ;;  %v394_v22 = vmax.f32 %v387_v15, 0.0 }
 0x1f3   :  { %v395_v21 = vmax.f32 %v389_v17, 0.0 }
 0x1f4   :  { %v396_v23 = vmax.f32 %v391_v19, 0.0 }
 0x1f5   :  { %v397_v24 = vpack.c.bf16 %v395_v21, %v393_v20 }
 0x1f6   :  { %v398_v25 = vpack.c.bf16 %v396_v23, %v394_v22 }
 0x1f8   :  { %563 = vmatprep.mubr.bf16.mxu0 %v398_v25 }
 0x1f9   :  { %564 = vmatmul.mubr.bf16.vlgmr.msra.gmra.mrb[4].mxu0 %v397_v24 }
 0x2cc   :  { %v662_v26 = vpop.f32.mrb[4].mxu0 }
 0x2cd   :  { %v663_v28 = vpop.f32.mrb[5].mxu0 }
 0x2ce   :  { %v664_v29 = vadd.f32 %v663_v28, %v662_v26  ;;  %v665_v30 = vpop.f32.mrb[6].mxu0 }
 0x2cf   :  { %v666_v31 = vpop.f32.mrb[7].mxu0 }
 0x2d0   :  { %v566_v32 = vadd.f32 %v664_v29, %v629_v27  ;;  %v667_v33 = vadd.f32 %v666_v31, %v665_v30 }
 0x2d2   :  { %572 = vst [vmem:[#allocation8] sm:$0xff] %v566_v32  ;;  %v569_v34 = vadd.f32 %v667_v33, %v629_v27 }
 0x2d4   :  { %573 = vst [vmem:[#allocation8 + $0x8] sm:$0xff] %v569_v34 }
 0x2d5   :  { %824 = shalt.err (!%p821_p0)
}
 0x2d6   :  { %s825_s13 = scalar_lea.hbm %s944_s4, 256 }
 0x2d7   :  { %p826_p1 = scmp.ne.s32.totalorder %s944_s4, %s825_s13  ;;  %p829_p2 = scmp.lt.u32.totalorder %s825_s13, %s944_s4 }
 0x2d9   :  { %p831_p3 = pnand %p829_p2, %p826_p1 }
 0x2db   :  { %834 = shalt.err (!%p831_p3)
}
 0x2dc   :  { %585 = dma.vmem_to_hbm [thread:$0]  %s580_s11, 256, %s944_s4, [#allocation4], %s842_s25, %s842_s25, %s843_s26  }
 0x2dd   :  { %839 = dma.done.wait [#allocation4], 256  }
 0x2de   :  { %840 = vsyncadd [#allocation4], 4294967040 }
 0x2df   :  { %589 = vsyncpa [#allocation3], 1 }
 0x2e0   :  { %590 = vsyncpa [#allocation6], 1 }
 0x2e1   :  { %591 = vsyncpa [#allocation4], 1 }

</bundles_post_ra>
